<compile_context>
chip_gen: v6e
topology: v6e:2x2x1
jax: 0.10.0
libtpu: 0.0.40
codegen_flags: <defaults>
</compile_context>

<pallas_src>
import functools

import jax
import jax.numpy as jnp
from jax.experimental import pallas as pl
from jax.experimental.pallas import tpu as pltpu

_LANES = 128
_SUBLANES = 8


def _round_up(x, m):
    return ((x + m - 1) // m) * m


def _cdiv(a, b):
    return (a + b - 1) // b


def _linear_packed_kernel(x_ref, wg_ref, b_ref, o_ref, *, pack):
    # x_ref : (tile_rows, pack)   pack consecutive samples per row
    # wg_ref: (pack, out_w)       wg[g] = weights in lanes [g*p_eff,(g+1)*p_eff), 0 elsewhere
    # b_ref : (1, out_w)          bias tiled across the pack groups
    # o_ref : (tile_rows, out_w)  lane-dense output block (out_w multiple of 128)
    #
    # Pure VPU broadcast FMAs; the binding resource stays the output store /
    # HBM write path, which is where a K=1 linear layer should sit.
    acc = b_ref[...] + x_ref[:, 0:1] * wg_ref[0:1, :]
    for g in range(1, pack):
        acc = acc + x_ref[:, g:g + 1] * wg_ref[g:g + 1, :]
    o_ref[...] = acc.astype(o_ref.dtype)


def linear_regression_forward(x, weight, bias, *,
                              max_block_bytes=2 * 1024 * 1024,
                              out_dtype=None):
    """Forward pass of nn.Linear(1, num_param).

    x:      (N, 1)  float32   (n_samples, in_features=1)
    weight: (P, 1)  float32   (PyTorch layout: out_features x in_features)
    bias:   (P,)    float32
    returns (N, P)  float32 == x @ weight.T + bias
    """
    n = x.shape[0]
    p = weight.shape[0]
    dt = x.dtype
    out_dtype = dt if out_dtype is None else out_dtype   # bf16 halves write traffic if tolerated

    # --- lane packing: p_eff is the smallest power-of-two width >= P that
    # divides 128 (min 8); pack = 128 // p_eff samples share one output row.
    if p <= _LANES:
        p_eff = _SUBLANES
        while p_eff < p:
            p_eff *= 2                       # 8, 16, 32, 64, 128
        pack = _LANES // p_eff
    else:
        p_eff = _round_up(p, _LANES)         # fallback: P > 128, no packing
        pack = 1
    out_w = p_eff * pack                     # lane width of kernel output (multiple of 128)

    # --- parameter packing (once, in the wrapper; grid-invariant in VMEM)
    w_pad = jnp.zeros((p_eff,), dt).at[:p].set(weight[:, 0].astype(dt))
    b_pad = jnp.zeros((p_eff,), dt).at[:p].set(bias.astype(dt))
    wg = jnp.zeros((pack, out_w), dt)
    for g in range(pack):
        wg = wg.at[g, g * p_eff:(g + 1) * p_eff].set(w_pad)
    b_row = jnp.tile(b_pad, pack)[None, :]   # (1, out_w)

    # --- adaptive row tiling: big blocks to amortize ~0.35 us/step overhead,
    # capped so double-buffered VMEM stays small on every generation, padding
    # bounded to < one sublane group per tile.
    rows_needed = max(1, _cdiv(n, pack))
    max_tile_rows = max(_SUBLANES,
                        (max_block_bytes // (out_w * 4)) // _SUBLANES * _SUBLANES)
    num_tiles = _cdiv(rows_needed, max_tile_rows)
    if num_tiles == 1 and rows_needed >= 2048:
        num_tiles = 2                        # let v7x's two TensorCores both run
    if num_tiles > 1 and num_tiles % 2 != 0:
        num_tiles += 1                       # balanced across 2 cores
    tile_rows = _round_up(_cdiv(rows_needed, num_tiles), _SUBLANES)
    rows_pad = tile_rows * num_tiles
    n_pad = rows_pad * pack

    # --- pack x: pack consecutive samples per row (keeps the final reshape free)
    x_flat = x.reshape(-1).astype(dt)
    if n_pad != n:
        x_flat = jnp.zeros((n_pad,), dt).at[:n].set(x_flat)
    x_pack = x_flat.reshape(rows_pad, pack)

    kernel = functools.partial(_linear_packed_kernel, pack=pack)

    out = pl.pallas_call(
        kernel,
        out_shape=jax.ShapeDtypeStruct((rows_pad, out_w), out_dtype),
        grid=(num_tiles,),
        in_specs=[
            # packed x: one row tile per grid step (tiny HBM traffic)
            pl.BlockSpec((tile_rows, pack), lambda i: (i, 0)),
            # weights / bias: grid-invariant -> resident in VMEM across steps
            pl.BlockSpec((pack, out_w), lambda i: (0, 0)),
            pl.BlockSpec((1, out_w), lambda i: (0, 0)),
        ],
        out_specs=pl.BlockSpec((tile_rows, out_w), lambda i: (i, 0)),
        compiler_params=pltpu.CompilerParams(
            dimension_semantics=("parallel",),
        ),
    )(x_pack, wg, b_row)

    # Free contiguous reshape: (rows_pad, pack*p_eff) -> (n_pad, p_eff).
    y = out.reshape(n_pad, p_eff)
    if n_pad != n:
        y = y[:n]            # cheap row slice of a row-major array
    if p_eff != p:
        y = y[:, :p]         # only when P is not already a divisor-of-128 width
    return y


if __name__ == "__main__":
    num_param = 32   # out_features of nn.Linear(1, num_param)
    n_samples = 8

    key = jax.random.PRNGKey(0)
    kx, kw, kb = jax.random.split(key, 3)

    # Deterministic parameter init mimicking nn.Linear's default:
    # U(-1/sqrt(fan_in), 1/sqrt(fan_in)) with fan_in = 1 -> U(-1, 1).
    weight = jax.random.uniform(kw, (num_param, 1), jnp.float32, -1.0, 1.0)
    bias = jax.random.uniform(kb, (num_param,), jnp.float32, -1.0, 1.0)

    x = jax.random.normal(kx, (n_samples, 1), jnp.float32)

    out = linear_regression_forward(x, weight, bias)
    out = jax.block_until_ready(out)

    # Reference check against plain JAX (same math as torch's F.linear).
    ref = x @ weight.T + bias
    assert out.shape == (n_samples, num_param)
    assert jnp.allclose(out, ref, atol=1e-5, rtol=1e-5)

    print("KERNEL_OK")
</pallas_src>

<mosaic_0001>
module attributes {stable_mosaic.version = 11 : i64} {
  func.func @_linear_packed_kernel(%arg0: i32, %arg1: memref<8x4xf32, #tpu.memory_space<vmem>>, %arg2: memref<4x128xf32, #tpu.memory_space<vmem>>, %arg3: memref<1x128xf32, #tpu.memory_space<vmem>>, %arg4: memref<8x128xf32, #tpu.memory_space<vmem>>) attributes {dimension_semantics = [#tpu.dimension_semantics<parallel>], iteration_bounds = array<i64: 1>, scalar_prefetch = 0 : i64, scratch_operands = 0 : i64, tpu.core_type = #tpu.core_type<tc>, window_params = [{transform_indices = @transform_0, window_bounds = array<i64: 8, 4>}, {pipeline_mode = #tpu.pipeline_mode<synchronous>, transform_indices = @transform_1, window_bounds = array<i64: 4, 128>}, {pipeline_mode = #tpu.pipeline_mode<synchronous>, transform_indices = @transform_2, window_bounds = array<i64: 1, 128>}, {transform_indices = @transform_3, window_bounds = array<i64: 8, 128>}]} {
    %c0 = arith.constant 0 : index
    %c0_0 = arith.constant 0 : index
    %0 = vector.load %arg3[%c0, %c0_0] : memref<1x128xf32, #tpu.memory_space<vmem>>, vector<1x128xf32>
    %c0_1 = arith.constant 0 : index
    %c0_2 = arith.constant 0 : index
    %1 = vector.load %arg1[%c0_1, %c0_2] : memref<8x4xf32, #tpu.memory_space<vmem>>, vector<8x1xf32>
    %c0_3 = arith.constant 0 : index
    %c0_4 = arith.constant 0 : index
    %2 = vector.load %arg2[%c0_3, %c0_4] : memref<4x128xf32, #tpu.memory_space<vmem>>, vector<1x128xf32>
    %3 = vector.broadcast %1 : vector<8x1xf32> to vector<8x128xf32>
    %4 = vector.broadcast %2 : vector<1x128xf32> to vector<8x128xf32>
    %5 = arith.mulf %3, %4 : vector<8x128xf32>
    %6 = vector.broadcast %0 : vector<1x128xf32> to vector<8x128xf32>
    %7 = arith.addf %6, %5 : vector<8x128xf32>
    %c0_5 = arith.constant 0 : index
    %c1 = arith.constant 1 : index
    %8 = vector.load %arg1[%c0_5, %c1] : memref<8x4xf32, #tpu.memory_space<vmem>>, vector<8x1xf32>
    %c1_6 = arith.constant 1 : index
    %c0_7 = arith.constant 0 : index
    %9 = vector.load %arg2[%c1_6, %c0_7] : memref<4x128xf32, #tpu.memory_space<vmem>>, vector<1x128xf32>
    %10 = vector.broadcast %8 : vector<8x1xf32> to vector<8x128xf32>
    %11 = vector.broadcast %9 : vector<1x128xf32> to vector<8x128xf32>
    %12 = arith.mulf %10, %11 : vector<8x128xf32>
    %13 = arith.addf %7, %12 : vector<8x128xf32>
    %c0_8 = arith.constant 0 : index
    %c2 = arith.constant 2 : index
    %14 = vector.load %arg1[%c0_8, %c2] : memref<8x4xf32, #tpu.memory_space<vmem>>, vector<8x1xf32>
    %c2_9 = arith.constant 2 : index
    %c0_10 = arith.constant 0 : index
    %15 = vector.load %arg2[%c2_9, %c0_10] : memref<4x128xf32, #tpu.memory_space<vmem>>, vector<1x128xf32>
    %16 = vector.broadcast %14 : vector<8x1xf32> to vector<8x128xf32>
    %17 = vector.broadcast %15 : vector<1x128xf32> to vector<8x128xf32>
    %18 = arith.mulf %16, %17 : vector<8x128xf32>
    %19 = arith.addf %13, %18 : vector<8x128xf32>
    %c0_11 = arith.constant 0 : index
    %c3 = arith.constant 3 : index
    %20 = vector.load %arg1[%c0_11, %c3] : memref<8x4xf32, #tpu.memory_space<vmem>>, vector<8x1xf32>
    %c3_12 = arith.constant 3 : index
    %c0_13 = arith.constant 0 : index
    %21 = vector.load %arg2[%c3_12, %c0_13] : memref<4x128xf32, #tpu.memory_space<vmem>>, vector<1x128xf32>
    %22 = vector.broadcast %20 : vector<8x1xf32> to vector<8x128xf32>
    %23 = vector.broadcast %21 : vector<1x128xf32> to vector<8x128xf32>
    %24 = arith.mulf %22, %23 : vector<8x128xf32>
    %25 = arith.addf %19, %24 : vector<8x128xf32>
    %c0_14 = arith.constant 0 : index
    %c0_15 = arith.constant 0 : index
    %26 = vector.load %arg4[%c0_14, %c0_15] : memref<8x128xf32, #tpu.memory_space<vmem>>, vector<8x128xf32>
    tpu.vector_store %arg4[%c0_14, %c0_15], %25 {strides = array<i32>} : memref<8x128xf32, #tpu.memory_space<vmem>>, vector<8x128xf32>,
    return
  }
  func.func @transform_0(%arg0: i32) -> (i32, i32) {
    %c0_i32 = arith.constant 0 : i32
    %c0_i32_0 = arith.constant 0 : i32
    return %arg0, %c0_i32 : i32, i32
  }
  func.func @transform_1(%arg0: i32) -> (i32, i32) {
    %c0_i32 = arith.constant 0 : i32
    %c0_i32_0 = arith.constant 0 : i32
    %c0_i32_1 = arith.constant 0 : i32
    return %c0_i32, %c0_i32_0 : i32, i32
  }
  func.func @transform_2(%arg0: i32) -> (i32, i32) {
    %c0_i32 = arith.constant 0 : i32
    %c0_i32_0 = arith.constant 0 : i32
    %c0_i32_1 = arith.constant 0 : i32
    return %c0_i32, %c0_i32_0 : i32, i32
  }
  func.func @transform_3(%arg0: i32) -> (i32, i32) {
    %c0_i32 = arith.constant 0 : i32
    %c0_i32_0 = arith.constant 0 : i32
    return %arg0, %c0_i32 : i32, i32
  }
}

</mosaic_0001>

<bundles_post_ra>
// kernel: tpu_custom_call.1
= control target key start
LH: loop header
LB: loop body
LE: loop exit
PB: predicated region body
PF: predicated region fallthrough
CT: control target
= control target key end

     0   :  { %v120_v1 = vmov 0   ;;  %v121_v2 = vmov 2   ;;  %s166_s0 = inlined_call_operand.vmem [shape: f32[8,4], index: 0, kind: input, shape index: {}]   ;;  %s167_s1 = inlined_call_operand.vmem [shape: f32[4,128], index: 1, kind: input, shape index: {}]   ;;  %s168_s2 = inlined_call_operand.vmem [shape: f32[1,128], index: 2, kind: input, shape index: {}]   ;;  %s169_s3 = inlined_call_operand.hbm [shape: f32[8,128], index: 3, kind: output, shape index: {}]  }
   0x1   :  { %v16_v0 = vld [vmem:[%s166_s0] sm:$0xff]  ;;  %93 = vset.pattern.permute.xlu0 %v120_v1  ;;  %95 = vset.pattern.permute.xlu1 %v121_v2 }
   0x2   :  { %20 = vperm.xlu0 %93, %v16_v0   ;;  %48 = vperm.xlu1 %95, %v16_v0  }
   0x3   :  { %8 = vsyncpa [#allocation3], 0  ;;  %v122_v3 = vmov 1   ;;  %v123_v4 = vmov 3   ;;  %v83_v5 = vld [vmem:[%s167_s1] ss:$0 sm:$0xff] }
   0x4   :  { %v84_v9 = vld [vmem:[%s168_s2] ss:$0 sm:$0xff]  ;;  %v85_v10 = vld [vmem:[%s167_s1 + $0x1] ss:$0 sm:$0xff]  ;;  %v86_v11 = vld [vmem:[%s167_s1 + $0x2] ss:$0 sm:$0xff] }
   0x5   :  { %v87_v13 = vld [vmem:[%s167_s1 + $0x3] ss:$0 sm:$0xff]  ;;  %s124_s2 = smov [#allocation2]  }
   0x6   :  { %94 = vset.pattern.permute.xlu0 %v122_v3  ;;  %96 = vset.pattern.permute.xlu1 %v123_v4  ;;  %s75_s23 = sshll.u32 %s124_s2, 4  ;;  %s76_s23 = int_to_ptr.vmem [resolvable:$true] %s75_s23 }
   0x7   :  { %37 = vperm.xlu0 %94, %v16_v0   ;;  %59 = vperm.xlu1 %96, %v16_v0   ;;  %s98_s24 = scalar_lea.vmem %s76_s23, 128  ;;  %p103_p1 = scmp.lt.s32.totalorder %s76_s23, %s76_s23 }
   0x8   :  { %p99_p0 = scmp.ne.s32.totalorder %s76_s23, %s98_s24  ;;  %p104_p2 = scmp.lt.s32.totalorder %s98_s24, %s98_s24 }
   0xa   :  { %p105_p3 = por %p104_p2, %p103_p1 }
   0xb   :  { %97 = vset.pattern.permute.xlu0 %v123_v4 }
   0xc   :  { %p106_p4 = pnand %p105_p3, %p99_p0 }
  0x7d   :  { %v21_v6 = vpop.permute.xlu0 %20  ;;  %v49_v7 = vpop.permute.xlu1 %48 }
  0x7e   :  { %v27_v8 = vmul.f32 %v83_v5, %v21_v6  ;;  %v55_v17 = vmul.f32 %v86_v11, %v49_v7 }
  0x80   :  { %v34_v15 = vadd.f32 %v84_v9, %v27_v8 }
  0x82   :  { %v38_v12 = vpop.permute.xlu0 %37  ;;  %v60_v14 = vpop.permute.xlu1 %59 }
  0x83   :  { %v44_v16 = vmul.f32 %v85_v10, %v38_v12  ;;  %v66_v19 = vmul.f32 %v87_v13, %v60_v14 }
  0x85   :  { %v45_v18 = vadd.f32 %v44_v16, %v34_v15 }
  0x87   :  { %v56_v20 = vadd.f32 %v55_v17, %v45_v18 }
  0x89   :  { %v67_v21 = vadd.f32 %v66_v19, %v56_v20 }
  0x8b   :  { %68 = vst [vmem:[#allocation2] sm:$0xff] %v67_v21 }
  0x8c   :  { %109 = shalt.err (!%p106_p4)
}
  0x8d   :  { %78 = dma.vmem_to_hbm [thread:$0]  %s76_s23, 128, %s169_s3, [#allocation3]  }
  0x8e   :  { %118 = dma.done.wait [#allocation3], 128  }
  0x8f   :  { %119 = vsyncadd [#allocation3], 4294967168 }
  0x90   :  { %82 = vsyncpa [#allocation3], 1 }

</bundles_post_ra>
